<compile_context>
chip_gen: v5e
topology: v5e:2x2
jax: 0.10.0
libtpu: 0.0.40
codegen_flags: <defaults>
</compile_context>

<pallas_src>
import numpy as np

import jax
import jax.numpy as jnp
from jax.experimental import pallas as pl
from jax.experimental.pallas import tpu as pltpu


def _round_up(x, m):
    return (x + m - 1) // m * m


# ---------------------------------------------------------------------------
# Kernel 1: per-hop node pre-projection  P1 = ent @ W1,  P2b = ent @ W2 + b
# (fc(cat(h,t)) == P1[head] + P2b[tail])
# ---------------------------------------------------------------------------
def proj_kernel(ent_ref, w1_ref, w2_ref, b_ref, p1_ref, p2_ref):
    x = ent_ref[...]
    p1_ref[...] = jnp.dot(x, w1_ref[...], preferred_element_type=jnp.float32)
    p2_ref[...] = jnp.dot(x, w2_ref[...], preferred_element_type=jnp.float32) + b_ref[...]


def rgat_project(ent, w1, w2, b, tile_n):
    n_pad, c_pad = ent.shape
    return pl.pallas_call(
        proj_kernel,
        out_shape=(jax.ShapeDtypeStruct((n_pad, c_pad), jnp.float32),
                   jax.ShapeDtypeStruct((n_pad, c_pad), jnp.float32)),
        grid=(n_pad // tile_n,),
        in_specs=[pl.BlockSpec((tile_n, c_pad), lambda i: (i, 0)),
                  pl.BlockSpec((c_pad, c_pad), lambda i: (0, 0)),
                  pl.BlockSpec((c_pad, c_pad), lambda i: (0, 0)),
                  pl.BlockSpec((1, c_pad), lambda i: (0, 0))],
        out_specs=(pl.BlockSpec((tile_n, c_pad), lambda i: (i, 0)),
                   pl.BlockSpec((tile_n, c_pad), lambda i: (i, 0))),
        compiler_params=pltpu.CompilerParams(dimension_semantics=("parallel",)),
    )(ent, w1, w2, b)


# ---------------------------------------------------------------------------
# Kernel 2: per-hop aggregation.
# grid = (node_tile i [parallel], edge_block j [arbitrary/reduction]).
# Scratch accumulators keep an exact online softmax per node; the fused
# epilogue does softmax divide + dropout + L2 normalize + residual add.
# ---------------------------------------------------------------------------
def agg_kernel(tbl_ref,                      # scalar prefetch (SMEM): (tiles, max_blocks)
               head_ref,                     # (1, TE) int32, sorted heads (sentinel = n_pad for pads)
               spre_ref, rel_ref, tval_ref,  # (TE, C) f32 edge blocks
               drop_ref, res_ref,            # (TN, C) f32 node-tile blocks
               ent_out_ref, res_out_ref,     # (TN, C) f32 outputs
               acc_ref, m_ref, l_ref):       # VMEM scratch accumulators
    i = pl.program_id(0)
    j = pl.program_id(1)
    tile_n = acc_ref.shape[0]
    tile_e = head_ref.shape[1]

    @pl.when(j == 0)
    def _init():
        acc_ref[...] = jnp.zeros_like(acc_ref)
        l_ref[...] = jnp.zeros_like(l_ref)
        m_ref[...] = jnp.full_like(m_ref, -1e30)

    # --- edge scores: e = LeakyReLU( sum(fc(cat(h,t)) * rel_emb, -1) ) ------
    e = jnp.sum(spre_ref[...] * rel_ref[...], axis=-1, keepdims=True)     # (TE, 1)
    e = jnp.where(e > 0, e, 0.2 * e)                                      # LeakyReLU(0.2)
    m_s = jnp.max(e, axis=(0, 1), keepdims=True)                          # (1, 1) block shift
    p = jnp.exp(e - m_s)                                                  # (TE, 1), in (0, 1]

    # --- lane-major in-tile one-hot scatter mask (TN, TE) -------------------
    local = head_ref[...] - i * tile_n                                    # (1, TE)
    node_iota = jax.lax.broadcasted_iota(jnp.int32, (tile_n, tile_e), 0)
    mask = node_iota == local                                             # (TN, TE) bool

    # segment reductions as MXU matmuls (softmax stats in f32, values in bf16)
    l_blk = jnp.dot(mask.astype(jnp.float32), p,
                    preferred_element_type=jnp.float32)                   # (TN, 1)
    wvals = (p * tval_ref[...]).astype(jnp.bfloat16)                      # (TE, C)
    a_blk = jnp.dot(mask.astype(jnp.bfloat16), wvals,
                    preferred_element_type=jnp.float32)                   # (TN, C)

    # --- exact online-softmax accumulator update -----------------------------
    m_old = m_ref[...]
    has = l_blk > 0.0
    m_new = jnp.where(has, jnp.maximum(m_old, m_s), m_old)
    s_old = jnp.exp(m_old - m_new)
    s_blk = jnp.where(has, jnp.exp(m_s - m_new), 0.0)
    l_ref[...] = s_old * l_ref[...] + s_blk * l_blk
    acc_ref[...] = s_old * acc_ref[...] + s_blk * a_blk
    m_ref[...] = m_new

    # --- fused epilogue: divide, dropout, F.normalize, residual -------------
    @pl.when(j == pl.num_programs(1) - 1)
    def _finalize():
        l = l_ref[...]
        inv_l = jnp.where(l > 0.0, 1.0 / l, 0.0)          # nodes w/o edges -> 0
        x = acc_ref[...] * inv_l
        x = x * drop_ref[...]                             # inverted-dropout scale
        ssq = jnp.sum(x * x, axis=-1, keepdims=True)
        x = x * jax.lax.rsqrt(jnp.maximum(ssq, 1e-24))    # == x / max(||x||, 1e-12)
        ent_out_ref[...] = x
        res_out_ref[...] = res_ref[...] + x


def rgat_agg(blk_tbl, head_row, s_pre, rel_e, t_vals, drop_scale, res,
             tile_n, tile_e):
    n_pad, c_pad = res.shape
    num_tiles = n_pad // tile_n
    max_blocks = blk_tbl.shape[1]

    edge_spec = pl.BlockSpec((tile_e, c_pad), lambda i, j, tbl: (tbl[i, j], 0))
    node_spec = pl.BlockSpec((tile_n, c_pad), lambda i, j, tbl: (i, 0))

    return pl.pallas_call(
        agg_kernel,
        out_shape=(jax.ShapeDtypeStruct((n_pad, c_pad), jnp.float32),
                   jax.ShapeDtypeStruct((n_pad, c_pad), jnp.float32)),
        grid_spec=pltpu.PrefetchScalarGridSpec(
            num_scalar_prefetch=1,
            grid=(num_tiles, max_blocks),
            in_specs=[
                pl.BlockSpec((1, tile_e), lambda i, j, tbl: (0, tbl[i, j])),  # heads
                edge_spec, edge_spec, edge_spec,                              # s_pre, rel, t
                node_spec, node_spec,                                         # drop, res
            ],
            out_specs=(node_spec, node_spec),
            scratch_shapes=[pltpu.VMEM((tile_n, c_pad), jnp.float32),
                            pltpu.VMEM((tile_n, 1), jnp.float32),
                            pltpu.VMEM((tile_n, 1), jnp.float32)],
        ),
        compiler_params=pltpu.CompilerParams(
            dimension_semantics=("parallel", "arbitrary"),
            vmem_limit_bytes=32 * 1024 * 1024),
    )(blk_tbl, head_row, s_pre, rel_e, t_vals, drop_scale, res)


# ---------------------------------------------------------------------------
# Host-side graph preprocessing (once per graph): sort edges by head, build
# the per-node-tile edge-block table used by the scalar-prefetch index_maps.
# ---------------------------------------------------------------------------
def build_graph_tiles(head_np, tail_np, etype_np, n_pad, tile_n, tile_e):
    E = int(head_np.shape[0])
    order = np.argsort(head_np, kind="stable")
    head_s = head_np[order].astype(np.int32)
    tail_s = tail_np[order].astype(np.int32)
    et_s = etype_np[order].astype(np.int32)

    num_tiles = n_pad // tile_n
    e_real_pad = _round_up(max(E, 1), tile_e)
    e_pad = e_real_pad + tile_e                 # + one all-dummy block at the end
    num_eblocks = e_pad // tile_e
    dummy_blk = num_eblocks - 1

    pad = e_pad - E
    # Padded edges: head = n_pad sentinel (outside every tile => masked out);
    # take-indices padded with 0 (valid rows; values never used).
    head_sentinel = np.concatenate([head_s, np.full((pad,), n_pad, np.int32)])
    head_take = np.concatenate([head_s, np.zeros((pad,), np.int32)])
    tail_take = np.concatenate([tail_s, np.zeros((pad,), np.int32)])
    et_take = np.concatenate([et_s, np.zeros((pad,), np.int32)])

    bounds = np.arange(num_tiles + 1, dtype=np.int64) * tile_n
    lo = np.searchsorted(head_s, bounds[:-1], side="left").astype(np.int64)
    hi = np.searchsorted(head_s, bounds[1:], side="left").astype(np.int64)
    nonempty = hi > lo
    blk_lo = lo // tile_e
    blk_hi = np.where(nonempty, hi - 1, lo) // tile_e
    nblk = np.where(nonempty, blk_hi - blk_lo + 1, 0).astype(np.int64)
    max_blocks = max(int(nblk.max()) if num_tiles > 0 else 1, 1)

    tbl = np.full((num_tiles, max_blocks), dummy_blk, dtype=np.int32)
    for i in range(num_tiles):
        for j in range(int(nblk[i])):
            tbl[i, j] = int(blk_lo[i]) + j

    return {
        "blk_tbl": jnp.asarray(tbl),
        "head_row": jnp.asarray(head_sentinel[None, :]),   # (1, E_pad) int32
        "head_take": jnp.asarray(head_take),
        "tail_take": jnp.asarray(tail_take),
        "etype_take": jnp.asarray(et_take),
    }


# ---------------------------------------------------------------------------
# Module-level wrapper (mirrors RGAT.forward)
# ---------------------------------------------------------------------------
def init_rgat_params(key, channel):
    """Deterministic init mirroring RGAT.__init__ shapes."""
    kW, ka, kfw, kfb = jax.random.split(key, 4)
    gain = 1.414
    limW = gain * (6.0 / (channel + channel)) ** 0.5
    W = jax.random.uniform(kW, (channel, channel), jnp.float32, -limW, limW)
    lima = gain * (6.0 / (2 * channel + 1)) ** 0.5
    a = jax.random.uniform(ka, (2 * channel, 1), jnp.float32, -lima, lima)
    bound = 1.0 / (2 * channel) ** 0.5
    fc_w = jax.random.uniform(kfw, (channel, 2 * channel), jnp.float32, -bound, bound)
    fc_b = jax.random.uniform(kfb, (channel,), jnp.float32, -bound, bound)
    return {"W": W, "a": a, "fc_w": fc_w, "fc_b": fc_b}   # W, a unused in forward (as in reference)


def rgat_forward(entity_emb, relation_emb, kg, params, n_hops,
                 mess_dropout=True, mess_dropout_rate=0.4, seed=0,
                 tile_n=128, tile_e=256):
    edge_index, edge_type = kg
    head_np = np.asarray(edge_index[0], dtype=np.int32)
    tail_np = np.asarray(edge_index[1], dtype=np.int32)
    etype_np = np.asarray(edge_type, dtype=np.int32)

    n, c = entity_emb.shape
    c_pad = _round_up(c, 128)                      # lane-dense channel storage
    tile_n = _round_up(min(tile_n, n), 8)
    tile_e = max(128, _round_up(tile_e, 128))
    n_pad = _round_up(n, tile_n)

    # zero-pad tables (padding is mathematically transparent: all zeros)
    ent = jnp.zeros((n_pad, c_pad), jnp.float32).at[:n, :c].set(entity_emb)
    rel = jnp.zeros((relation_emb.shape[0], c_pad), jnp.float32).at[:, :c].set(relation_emb)
    res = ent

    # fc(cat(h,t)) = h @ W1 + t @ W2 + b   (Linear weight split, zero-padded)
    w1 = jnp.zeros((c_pad, c_pad), jnp.float32).at[:c, :c].set(params["fc_w"][:, :c].T)
    w2 = jnp.zeros((c_pad, c_pad), jnp.float32).at[:c, :c].set(params["fc_w"][:, c:].T)
    b = jnp.zeros((1, c_pad), jnp.float32).at[0, :c].set(params["fc_b"])

    g = build_graph_tiles(head_np, tail_np, etype_np, n_pad, tile_n, tile_e)
    rel_e = jnp.take(rel, g["etype_take"], axis=0)          # hop-invariant (E_pad, C_pad)

    base_key = jax.random.PRNGKey(seed)
    keep_p = 1.0 - float(mess_dropout_rate)
    for hop in range(n_hops):
        p1, p2b = rgat_project(ent, w1, w2, b, tile_n)
        # TODO(synk): fuse these row gathers into the agg kernel with manual
        # make_async_copy row DMAs driven by the sorted edge list.
        s_pre = jnp.take(p1, g["head_take"], axis=0) + jnp.take(p2b, g["tail_take"], axis=0)
        t_vals = jnp.take(ent, g["tail_take"], axis=0)

        if mess_dropout:
            # TODO(synk): in-kernel pltpu.prng_* has no interpret-mode lowering;
            # the keep/scale mask is generated in glue and fused in the epilogue.
            k = jax.random.fold_in(base_key, hop)
            keep = jax.random.bernoulli(k, keep_p, (n_pad, c_pad))
            drop_scale = keep.astype(jnp.float32) * (1.0 / keep_p)
        else:
            drop_scale = jnp.ones((n_pad, c_pad), jnp.float32)

        ent, res = rgat_agg(g["blk_tbl"], g["head_row"], s_pre, rel_e, t_vals,
                            drop_scale, res, tile_n, tile_e)

    # Faithful to the reference: forward returns entity_emb (not entity_res_emb).
    return ent[:n, :c]


if __name__ == "__main__":
    key = jax.random.PRNGKey(0)
    k_ent, k_rel, k_h, k_t, k_et, k_par = jax.random.split(key, 6)

    N_ENT, N_REL, CHANNEL, N_EDGE, N_HOPS = 100, 7, 32, 400, 2

    entity_emb = jax.random.normal(k_ent, (N_ENT, CHANNEL), jnp.float32)
    relation_emb = jax.random.normal(k_rel, (N_REL, CHANNEL), jnp.float32)
    head = jax.random.randint(k_h, (N_EDGE,), 0, N_ENT, jnp.int32)
    tail = jax.random.randint(k_t, (N_EDGE,), 0, N_ENT, jnp.int32)
    edge_type = jax.random.randint(k_et, (N_EDGE,), 0, N_REL, jnp.int32)
    kg = (jnp.stack([head, tail], axis=0), edge_type)

    params = init_rgat_params(k_par, CHANNEL)

    out = rgat_forward(entity_emb, relation_emb, kg, params,
                       n_hops=N_HOPS, mess_dropout=True,
                       mess_dropout_rate=0.4, seed=0,
                       tile_n=64, tile_e=128)
    out = jax.block_until_ready(out)
    assert out.shape == (N_ENT, CHANNEL) and out.dtype == jnp.float32
    assert bool(jnp.all(jnp.isfinite(out)))
    print("KERNEL_OK")
</pallas_src>

<mosaic_0001>
module attributes {stable_mosaic.version = 11 : i64} {
  func.func @proj_kernel(%arg0: i32, %arg1: memref<64x128xf32, #tpu.memory_space<vmem>>, %arg2: memref<128x128xf32, #tpu.memory_space<vmem>>, %arg3: memref<128x128xf32, #tpu.memory_space<vmem>>, %arg4: memref<1x128xf32, #tpu.memory_space<vmem>>, %arg5: memref<64x128xf32, #tpu.memory_space<vmem>>, %arg6: memref<64x128xf32, #tpu.memory_space<vmem>>) attributes {dimension_semantics = [#tpu.dimension_semantics<parallel>], iteration_bounds = array<i64: 2>, scalar_prefetch = 0 : i64, scratch_operands = 0 : i64, tpu.core_type = #tpu.core_type<tc>, window_params = [{transform_indices = @transform_0, window_bounds = array<i64: 64, 128>}, {pipeline_mode = #tpu.pipeline_mode<synchronous>, transform_indices = @transform_1, window_bounds = array<i64: 128, 128>}, {pipeline_mode = #tpu.pipeline_mode<synchronous>, transform_indices = @transform_2, window_bounds = array<i64: 128, 128>}, {pipeline_mode = #tpu.pipeline_mode<synchronous>, transform_indices = @transform_3, window_bounds = array<i64: 1, 128>}, {transform_indices = @transform_4, window_bounds = array<i64: 64, 128>}, {transform_indices = @transform_5, window_bounds = array<i64: 64, 128>}]} {
    %c0 = arith.constant 0 : index
    %c0_0 = arith.constant 0 : index
    %0 = vector.load %arg1[%c0, %c0_0] : memref<64x128xf32, #tpu.memory_space<vmem>>, vector<64x128xf32>
    %c0_1 = arith.constant 0 : index
    %c0_2 = arith.constant 0 : index
    %1 = vector.load %arg2[%c0_1, %c0_2] : memref<128x128xf32, #tpu.memory_space<vmem>>, vector<128x128xf32>
    %cst = arith.constant dense<0.000000e+00> : vector<64x128xf32>
    %2 = tpu.matmul %0, %1, %cst {dimension_numbers = #tpu.dot_dimension_numbers<[1], [0], [0], [1], [0, 0, 1, 1], [], []>} : vector<64x128xf32>, vector<128x128xf32>, vector<64x128xf32> -> vector<64x128xf32>
    %c0_3 = arith.constant 0 : index
    %c0_4 = arith.constant 0 : index
    %3 = vector.load %arg5[%c0_3, %c0_4] : memref<64x128xf32, #tpu.memory_space<vmem>>, vector<64x128xf32>
    tpu.vector_store %arg5[%c0_3, %c0_4], %2 {strides = array<i32>} : memref<64x128xf32, #tpu.memory_space<vmem>>, vector<64x128xf32>,
    %c0_5 = arith.constant 0 : index
    %c0_6 = arith.constant 0 : index
    %4 = vector.load %arg3[%c0_5, %c0_6] : memref<128x128xf32, #tpu.memory_space<vmem>>, vector<128x128xf32>
    %cst_7 = arith.constant dense<0.000000e+00> : vector<64x128xf32>
    %5 = tpu.matmul %0, %4, %cst_7 {dimension_numbers = #tpu.dot_dimension_numbers<[1], [0], [0], [1], [0, 0, 1, 1], [], []>} : vector<64x128xf32>, vector<128x128xf32>, vector<64x128xf32> -> vector<64x128xf32>
    %c0_8 = arith.constant 0 : index
    %c0_9 = arith.constant 0 : index
    %6 = vector.load %arg4[%c0_8, %c0_9] : memref<1x128xf32, #tpu.memory_space<vmem>>, vector<1x128xf32>
    %7 = vector.broadcast %6 : vector<1x128xf32> to vector<64x128xf32>
    %8 = arith.addf %5, %7 : vector<64x128xf32>
    %c0_10 = arith.constant 0 : index
    %c0_11 = arith.constant 0 : index
    %9 = vector.load %arg6[%c0_10, %c0_11] : memref<64x128xf32, #tpu.memory_space<vmem>>, vector<64x128xf32>
    tpu.vector_store %arg6[%c0_10, %c0_11], %8 {strides = array<i32>} : memref<64x128xf32, #tpu.memory_space<vmem>>, vector<64x128xf32>,
    return
  }
  func.func @transform_0(%arg0: i32) -> (i32, i32) {
    %c0_i32 = arith.constant 0 : i32
    %c0_i32_0 = arith.constant 0 : i32
    return %arg0, %c0_i32 : i32, i32
  }
  func.func @transform_1(%arg0: i32) -> (i32, i32) {
    %c0_i32 = arith.constant 0 : i32
    %c0_i32_0 = arith.constant 0 : i32
    %c0_i32_1 = arith.constant 0 : i32
    return %c0_i32, %c0_i32_0 : i32, i32
  }
  func.func @transform_2(%arg0: i32) -> (i32, i32) {
    %c0_i32 = arith.constant 0 : i32
    %c0_i32_0 = arith.constant 0 : i32
    %c0_i32_1 = arith.constant 0 : i32
    return %c0_i32, %c0_i32_0 : i32, i32
  }
  func.func @transform_3(%arg0: i32) -> (i32, i32) {
    %c0_i32 = arith.constant 0 : i32
    %c0_i32_0 = arith.constant 0 : i32
    %c0_i32_1 = arith.constant 0 : i32
    return %c0_i32, %c0_i32_0 : i32, i32
  }
  func.func @transform_4(%arg0: i32) -> (i32, i32) {
    %c0_i32 = arith.constant 0 : i32
    %c0_i32_0 = arith.constant 0 : i32
    return %arg0, %c0_i32 : i32, i32
  }
  func.func @transform_5(%arg0: i32) -> (i32, i32) {
    %c0_i32 = arith.constant 0 : i32
    %c0_i32_0 = arith.constant 0 : i32
    return %arg0, %c0_i32 : i32, i32
  }
}

</mosaic_0001>

<bundles_post_ra>
// kernel: tpu_custom_call.1
= control target key start
LH: loop header
LB: loop body
LE: loop exit
PB: predicated region body
PF: predicated region fallthrough
CT: control target
= control target key end

     0   :  { %11 = vsyncpa [#allocation3], 0  ;;  %s1175_s0 = inlined_call_operand.hbm [shape: f32[128,128], index: 0, kind: input, shape index: {}]   ;;  %s1176_s1 = inlined_call_operand.hbm [shape: f32[128,128], index: 1, kind: input, shape index: {}]   ;;  %s1177_s2 = inlined_call_operand.hbm [shape: f32[128,128], index: 2, kind: input, shape index: {}]   ;;  %s1178_s3 = inlined_call_operand.vmem [shape: f32[1,128], index: 3, kind: input, shape index: {}]   ;;  %s1179_s4 = inlined_call_operand.hbm [shape: f32[128,128], index: 4, kind: output, shape index: {0}]   ;;  %s1180_s5 = inlined_call_operand.hbm [shape: f32[128,128], index: 5, kind: output, shape index: {1}]  }
   0x1   :  { %13 = vsyncpa [#allocation3 + $0x1], 0 }
   0x2   :  { %14 = vsyncpa [#allocation6], 0 }
   0x3   :  { %15 = vsyncpa [#allocation4], 0 }
   0x4   :  { %17 = vsyncpa [#allocation4 + $0x1], 0 }
   0x5   :  { %18 = vsyncpa [#allocation10], 0 }
   0x6   :  { %20 = vsyncpa [#allocation10 + $0x1], 0  ;;  %s961_s18 = smov 0   ;;  %s963_s19 = smov 0  }
   0x7   :  { %s965_s20 = smov 0   ;;  %s967_s21 = smov 0  }
   0x8 LB: > { %s982_s22 = sadd.s32 4294967295, %s923_s21   ;;  %s597_s23 = sadd.s32 4294967294, %s923_s21   ;;  %s923_s21 = sphi %s967_s21, %s1192_s21   ;;  %s919_s20 = sphi %s965_s20, %s1191_s20   ;;  %s915_s19 = sphi %s963_s19, %s1190_s19   ;;  %s911_s18 = sphi %s961_s18, %s1189_s18  }
   0x9   : > { %p46_p0 = scmp.ne.s32.totalorder %s915_s19, %s911_s18  ;;  %p47_p1 = scmp.eq.s32.totalorder %s982_s22, 0 }
   0xa   : > { %p133_p2 = scmp.eq.s32.totalorder %s982_s22, 1  ;;  %p139_p3 = scmp.eq.s32.totalorder %s597_s23, 1 }
   0xb   : > { %p991_p4 = por %p47_p1, %p46_p0  ;;  %p598_p5 = scmp.ge.s32.totalorder %s923_s21, 1 }
   0xc   : > { %p996_p6 = por %p139_p3, %p46_p0  ;;  %p172_p7 = scmp.lt.s32.totalorder %s923_s21, 3 }
   0xd   : > { %s183_s28 = sshll.u32 %s1176_s1, 4  ;;  %s925_s30 = smov [#allocation5]   ;;  %s184_s28 = int_to_ptr.hbm [resolvable:$true] %s183_s28 }
   0xe   : > { %p1004_p8 = pnand %p598_p5, %p172_p7  ;;  %s185_s6 = sshll.u32 %s925_s30, 4  ;;  %s186_s6 = int_to_ptr.vmem [resolvable:$true] %s185_s6 }
   0xf   : > { %s197_s9 = sshll.u32 %s1177_s2, 4  ;;  %s1181_s10 = smov 128   ;;  %s198_s9 = int_to_ptr.hbm [resolvable:$true] %s197_s9 }
  0x10   : > { %p668_p9 = pneg %p1004_p8  ;;  %s927_s11 = smov 8  }
  0x11   : > { %s928_s12 = smov [#allocation7]   ;;  %s1023_s14 = sadd.s32 1, %s923_s21  }
  0x12   : > { %p669_p10 = pnand %p668_p9, %p47_p1  ;;  %s199_s13 = sshll.u32 %s928_s12, 4  ;;  %s200_s13 = int_to_ptr.vmem [resolvable:$true] %s199_s13 }
  0x13   : > { %s33_s15 = sadd.s32 1, %s919_s20  ;;  %s30_s16 = ssub.s32 %s923_s21, %s1023_s14 }
  0x14   : > { %671 = dma.hbm_to_vmem [thread:$0]  (!%p669_p10), %s184_s28, 2048, %s186_s6, [#allocation6], %s1181_s10, %s1181_s10, %s927_s11  }
  0x15   : > { %674 = dma.hbm_to_vmem [thread:$0]  (!%p669_p10), %s198_s9, 2048, %s200_s13, [#allocation6], %s1181_s10, %s1181_s10, %s927_s11  }
  0x16   : > { %p40_p12 = scmp.ne.s32.totalorder %s919_s20, %s915_s19  ;;  %p31_p13 = scmp.eq.s32.totalorder %s30_s16, 0 }
  0x17   : > { %p41_p0 = scmp.eq.s32.totalorder %s923_s21, 0  ;;  %p688_p5 = scmp.lt.s32.totalorder %s923_s21, 2 }
  0x18   : > { %p1033_p3 = por %p133_p2, %p40_p12  ;;  %s216_s26 = sand.u32 1, %s919_s20  }
  0x19   : > { %s1039_s23 = scalar_select %p31_p13, %s919_s20, %s33_s15  }
  0x1a   : > { %p42_p7 = por %p41_p0, %p40_p12  ;;  %s602_s27 = sshll.u32 %s216_s26, 6 }
  0x1b   : > { %s619_s28 = sshll.u32 %s923_s21, 6  ;;  %s220_s8 = scalar_lea.vmem [#allocation2], %s602_s27 }
  0x1c   : > { %s225_s7 = scalar_lea.hbm %s1175_s0, %s619_s28  ;;  %s228_s9 = sshll.u32 %s220_s8, 4  ;;  %s229_s9 = int_to_ptr.vmem [resolvable:$true] %s228_s9 }
  0x1d   : > { %s226_s12 = sshll.u32 %s225_s7, 4  ;;  %p1046_p2 = pnand %p688_p5, %p42_p7  ;;  %s227_s12 = int_to_ptr.hbm [resolvable:$true] %s226_s12 }
  0x1e   : > { %s217_s15 = scalar_lea.sflag [#allocation3], %s216_s26  ;;  %s791_s16 = sshra.s32 %s227_s12, 4  ;;  %s792_s16 = int_to_ptr.hbm [resolvable:$true] %s791_s16 }
  0x1f   : > { %s793_s10 = scalar_lea.hbm %s792_s16, 64  ;;  %p795_p10 = pneg %p1046_p2 }
  0x20   : > { %p794_p9 = scmp.ne.s32.totalorder %s792_s16, %s793_s10  ;;  %s798_s30 = scalar_lea.hbm %s1175_s0, 128 }
  0x21   : > { %p799_p0 = scmp.lt.s32.totalorder %s792_s16, %s1175_s0  ;;  %p800_p5 = scmp.lt.s32.totalorder %s798_s30, %s793_s10 }
  0x22   : > { %p796_p12 = pnand %p795_p10, %p794_p9 }
  0x23   : > { %p801_p7 = por %p800_p5, %p799_p0 }
  0x24   : > { %p797_p13 = pneg %p796_p12 }
  0x26   : > { %p802_p11 = pnand %p801_p7, %p797_p13 }
  0x28   : > { %805 = shalt.err (!%p802_p11)
}
  0x29   : > { %s1187_s26 = smov 128   ;;  %240 = sbr.rel (%p1004_p8) target bundleno = 254 (0xfe), region = 36 }
  0x2a   : > { %678 = dma.hbm_to_vmem [thread:$0]  (!%p1046_p2), %s227_s12, 1024, %s229_s9, %s217_s15, %s1187_s26, %s1187_s26, %s927_s11  }
  0x2b   : > { %s1066_s8 = sand.u32 (!%p1004_p8), 1, %s915_s19  }
  0x2c   : > { %s1069_s16 = sshll.u32 (!%p1004_p8), %s1066_s8, 6  ;;  %s243_s10 = scalar_lea.sflag (!%p1004_p8), [#allocation3], %s1066_s8 }
  0x2d   : > { %s1073_s28 = scalar_lea.vmem (!%p1004_p8), [#allocation2], %s1069_s16 }
  0x2e   : > { %894 = dma.done.wait (%p991_p4), %s243_s10, 1024  }
  0x2f   : > { %896 = vsyncadd (%p991_p4), %s243_s10, 4294966272 }
  0x30   : > { %898 = dma.done.wait (%p47_p1), [#allocation6], 4096  }
  0x31   : > { %900 = vsyncadd (%p47_p1), [#allocation6], 4294963200  ;;  %v380_v0 = vld [vmem:[#allocation7 + $0x78] sm:$0xff]  ;;  %v379_v2 = vld [vmem:[#allocation7 + $0x70] sm:$0xff]  ;;  %s1095_s11 = scalar_lea.vmem [#allocation8], %s1069_s16  ;;  %s1099_s9 = scalar_lea.vmem [#allocation9], %s1069_s16 }
  0x32   : > { %v315_v1 = vld [vmem:[#allocation5 + $0x78] sm:$0xff]  ;;  %638 = vmatpush.msra.mxu3 %v380_v0  ;;  %v314_v3 = vld [vmem:[#allocation5 + $0x70] sm:$0xff]  ;;  %v378_v4 = vld [vmem:[#allocation7 + $0x68] sm:$0xff]  ;;  %385 = vmatpush.msra.mxu1 %v380_v0  ;;  %s620_s12 = sshll.u32 %s982_s22, 6  ;;  %s452_s30 = sshll.u32 %s1095_s11, 4  ;;  %s1121_s30 = int_to_ptr.vmem [resolvable:$true] %s452_s30 }
  0x33   : > { %622 = vmatpush.msra.mxu2 %v315_v1  ;;  %v313_v5 = vld [vmem:[#allocation5 + $0x68] sm:$0xff]  ;;  %316 = vmatpush.msra.mxu0 %v315_v1  ;;  %v377_v6 = vld [vmem:[#allocation7 + $0x60] sm:$0xff]  ;;  %v376_v8 = vld [vmem:[#allocation7 + $0x58] sm:$0xff]  ;;  %s451_s27 = scalar_lea.hbm %s1179_s4, %s620_s12  ;;  %s468_s26 = scalar_lea.hbm %s1180_s5, %s620_s12 }
  0x34   : > { %639 = vmatpush.msra.mxu3 %v379_v2  ;;  %v312_v7 = vld [vmem:[#allocation5 + $0x60] sm:$0xff]  ;;  %386 = vmatpush.msra.mxu1 %v379_v2  ;;  %v311_v9 = vld [vmem:[#allocation5 + $0x58] sm:$0xff]  ;;  %v375_v10 = vld [vmem:[#allocation7 + $0x50] sm:$0xff]  ;;  %s454_s16 = sshll.u32 %s451_s27, 4  ;;  %s469_s22 = sshll.u32 %s1099_s9, 4  ;;  %s455_s16 = int_to_ptr.hbm [resolvable:$true] %s454_s16  ;;  %s1125_s22 = int_to_ptr.vmem [resolvable:$true] %s469_s22 }
  0x35   : > { %623 = vmatpush.msra.mxu2 %v314_v3  ;;  %317 = vmatpush.msra.mxu0 %v314_v3  ;;  %v310_v11 = vld [vmem:[#allocation5 + $0x50] sm:$0xff]  ;;  %v374_v12 = vld [vmem:[#allocation7 + $0x48] sm:$0xff]  ;;  %v373_v14 = vld [vmem:[#allocation7 + $0x40] sm:$0xff]  ;;  %s471_s10 = sshll.u32 %s468_s26, 4  ;;  %s835_s24 = sshra.s32 %s455_s16, 4  ;;  %s1128_s10 = int_to_ptr.hbm [resolvable:$true] %s471_s10  ;;  %s836_s24 = int_to_ptr.hbm [resolvable:$true] %s835_s24 }
  0x36   : > { %640 = vmatpush.msra.mxu3 %v378_v4  ;;  %387 = vmatpush.msra.mxu1 %v378_v4  ;;  %v309_v13 = vld [vmem:[#allocation5 + $0x48] sm:$0xff]  ;;  %v308_v15 = vld [vmem:[#allocation5 + $0x40] sm:$0xff]  ;;  %v372_v16 = vld [vmem:[#allocation7 + $0x38] sm:$0xff]  ;;  %s837_s29 = scalar_lea.hbm %s836_s24, 64  ;;  %s841_s15 = scalar_lea.hbm %s1179_s4, 128 }
  0x37   : > { %624 = vmatpush.msra.mxu2 %v313_v5  ;;  %318 = vmatpush.msra.mxu0 %v313_v5  ;;  %v307_v17 = vld [vmem:[#allocation5 + $0x38] sm:$0xff]  ;;  %v371_v18 = vld [vmem:[#allocation7 + $0x30] sm:$0xff]  ;;  %v370_v20 = vld [vmem:[#allocation7 + $0x28] sm:$0xff]  ;;  %p838_p1 = scmp.ne.s32.totalorder %s836_s24, %s837_s29  ;;  %p842_p11 = scmp.lt.s32.totalorder %s836_s24, %s1179_s4 }
  0x38   : > { %641 = vmatpush.msra.mxu3 %v377_v6  ;;  %388 = vmatpush.msra.mxu1 %v377_v6  ;;  %v306_v19 = vld [vmem:[#allocation5 + $0x30] sm:$0xff]  ;;  %v305_v21 = vld [vmem:[#allocation5 + $0x28] sm:$0xff]  ;;  %v369_v22 = vld [vmem:[#allocation7 + $0x20] sm:$0xff]  ;;  %p843_p2 = scmp.lt.s32.totalorder %s841_s15, %s837_s29 }
  0x39   : > { %625 = vmatpush.msra.mxu2 %v312_v7  ;;  %319 = vmatpush.msra.mxu0 %v312_v7  ;;  %v304_v23 = vld [vmem:[#allocation5 + $0x20] sm:$0xff]  ;;  %v368_v24 = vld [vmem:[#allocation7 + $0x18] sm:$0xff]  ;;  %v367_v26 = vld [vmem:[#allocation7 + $0x10] sm:$0xff]  ;;  %p839_p4 = pnand %p838_p1, %p1033_p3 }
  0x3a   : > { %642 = vmatpush.msra.mxu3 %v376_v8  ;;  %389 = vmatpush.msra.mxu1 %v376_v8  ;;  %v303_v25 = vld [vmem:[#allocation5 + $0x18] sm:$0xff]  ;;  %v302_v27 = vld [vmem:[#allocation5 + $0x10] sm:$0xff]  ;;  %v366_v28 = vld [vmem:[#allocation7 + $0x8] sm:$0xff]  ;;  %p844_p9 = por %p843_p2, %p842_p11 }
  0x3b   : > { %626 = vmatpush.msra.mxu2 %v311_v9  ;;  %320 = vmatpush.msra.mxu0 %v311_v9  ;;  %v301_v29 = vld [vmem:[#allocation5 + $0x8] sm:$0xff]  ;;  %v365_v30 = vld [vmem:[#allocation7] sm:$0xff]  ;;  %v298_v36 = vld [vmem:[%s1073_s28 + $0x30] sm:$0xff]  ;;  %p840_p8 = pneg %p839_p4 }
  0x3c   : > { %643 = vmatpush.msra.mxu3 %v375_v10  ;;  %390 = vmatpush.msra.mxu1 %v375_v10  ;;  %v300_v31 = vld [vmem:[#allocation5] sm:$0xff]  ;;  %v297_v34 = vld [vmem:[%s1073_s28 + $0x28] sm:$0xff]  ;;  %v294_v37 = vld [vmem:[%s1073_s28 + $0x10] sm:$0xff] }
  0x3d   : > { %627 = vmatpush.msra.mxu2 %v310_v11  ;;  %321 = vmatpush.msra.mxu0 %v310_v11  ;;  %v296_v32 = vld [vmem:[%s1073_s28 + $0x20] sm:$0xff]  ;;  %v293_v35 = vld [vmem:[%s1073_s28 + $0x8] sm:$0xff]  ;;  %v299_v38 = vld [vmem:[%s1073_s28 + $0x38] sm:$0xff]  ;;  %p845_p10 = pnand %p844_p9, %p840_p8 }
  0x3e   : > { %644 = vmatpush.msra.mxu3 %v374_v12  ;;  %391 = vmatpush.msra.mxu1 %v374_v12  ;;  %v292_v33 = vld [vmem:[%s1073_s28] sm:$0xff]  ;;  %v295_v39 = vld [vmem:[%s1073_s28 + $0x18] sm:$0xff]  ;;  %s435_s28 = scalar_lea.sflag [#allocation4], %s1066_s8 }
  0x3f   : > { %628 = vmatpush.msra.mxu2 %v309_v13  ;;  %322 = vmatpush.msra.mxu0 %v309_v13  ;;  %v730_v40 = vld [vmem:[%s1178_s3] ss:$0 sm:$0xff] }
  0x40   : > { %645 = vmatpush.msra.mxu3 %v373_v14  ;;  %392 = vmatpush.msra.mxu1 %v373_v14 }
  0x41   : > { %629 = vmatpush.msra.mxu2 %v308_v15  ;;  %323 = vmatpush.msra.mxu0 %v308_v15 }
  0x42   : > { %646 = vmatpush.msra.mxu3 %v372_v16  ;;  %393 = vmatpush.msra.mxu1 %v372_v16 }
  0x43   : > { %630 = vmatpush.msra.mxu2 %v307_v17  ;;  %324 = vmatpush.msra.mxu0 %v307_v17 }
  0x44   : > { %647 = vmatpush.msra.mxu3 %v371_v18  ;;  %394 = vmatpush.msra.mxu1 %v371_v18 }
  0x45   : > { %631 = vmatpush.msra.mxu2 %v306_v19  ;;  %325 = vmatpush.msra.mxu0 %v306_v19 }
  0x46   : > { %648 = vmatpush.msra.mxu3 %v370_v20  ;;  %395 = vmatpush.msra.mxu1 %v370_v20 }
  0x47   : > { %632 = vmatpush.msra.mxu2 %v305_v21  ;;  %326 = vmatpush.msra.mxu0 %v305_v21 }
  0x48   : > { %649 = vmatpush.msra.mxu3 %v369_v22  ;;  %396 = vmatpush.msra.mxu1 %v369_v22 }
  0x49   : > { %633 = vmatpush.msra.mxu2 %v304_v23  ;;  %327 = vmatpush.msra.mxu0 %v304_v23 }
  0x4a   : > { %650 = vmatpush.msra.mxu3 %v368_v24  ;;  %397 = vmatpush.msra.mxu1 %v368_v24 }
  0x4b   : > { %634 = vmatpush.msra.mxu2 %v303_v25  ;;  %328 = vmatpush.msra.mxu0 %v303_v25 }
  0x4c   : > { %651 = vmatpush.msra.mxu3 %v367_v26  ;;  %398 = vmatpush.msra.mxu1 %v367_v26 }
  0x4d   : > { %635 = vmatpush.msra.mxu2 %v302_v27  ;;  %329 = vmatpush.msra.mxu0 %v302_v27 }
  0x4e   : > { %652 = vmatpush.msra.mxu3 %v366_v28  ;;  %399 = vmatpush.msra.mxu1 %v366_v28 }
  0x4f   : > { %636 = vmatpush.msra.mxu2 %v301_v29  ;;  %330 = vmatpush.msra.mxu0 %v301_v29 }
  0x50   : > { %653 = vmatpush.msra.mxu3 %v365_v30  ;;  %400 = vmatpush.msra.mxu1 %v365_v30 }
  0x51   : > { %637 = vmatpush.msra.mxu2 %v300_v31  ;;  %413 = vmatmul.f32.vlgmr.msra.gmra.mxu3 %v296_v32 }
  0x52   : > { %344 = vmatmul.f32.vlgmr.msra.gmra.mxu2 %v296_v32  ;;  %331 = vmatpush.msra.mxu0 %v300_v31 }
  0x53   : > { %401 = vmatmul.f32.vlgmr.msra.gmra.mxu1 %v292_v33  ;;  %332 = vmatmul.f32.vlgmr.msra.gmra.mxu0 %v292_v33 }
  0x59   : > { %416 = vmatmul.f32.gmra.mxu3 %v297_v34 }
  0x5a   : > { %347 = vmatmul.f32.gmra.mxu2 %v297_v34 }
  0x5b   : > { %404 = vmatmul.f32.gmra.mxu1 %v293_v35  ;;  %335 = vmatmul.f32.gmra.mxu0 %v293_v35 }
  0x61   : > { %419 = vmatmul.f32.gmra.mxu3 %v298_v36 }
  0x62   : > { %350 = vmatmul.f32.gmra.mxu2 %v298_v36 }
  0x63   : > { %407 = vmatmul.f32.gmra.mxu1 %v294_v37  ;;  %338 = vmatmul.f32.gmra.mxu0 %v294_v37 }
  0x69   : > { %422 = vmatmul.f32.gmra.mxu3 %v299_v38 }
  0x6a   : > { %353 = vmatmul.f32.gmra.mxu2 %v299_v38 }
  0x6b   : > { %410 = vmatmul.f32.gmra.mxu1 %v295_v39  ;;  %341 = vmatmul.f32.gmra.mxu0 %v295_v39 }
  0xd0   : > { %v402_v41 = vpop.f32.mrf.mxu1  ;;  %v333_v42 = vpop.f32.mrf.mxu0 }
  0xd1   : > { %v403_v43 = vadd.f32 %v730_v40, %v402_v41  ;;  %357 = vst [vmem:[%s1095_s11] sm:$0xff] %v333_v42 }
  0xd3   : > { %426 = vst [vmem:[%s1099_s9] sm:$0xff] %v403_v43 }
  0xd4   : > { %v414_v44 = vpop.f32.mrf.mxu3 }
  0xd5   : > { %v345_v45 = vpop.f32.mrf.mxu2  ;;  %v415_v46 = vadd.f32 %v730_v40, %v414_v44 }
  0xd6   : > { %361 = vst [vmem:[%s1095_s11 + $0x20] sm:$0xff] %v345_v45 }
  0xd7   : > { %430 = vst [vmem:[%s1099_s9 + $0x20] sm:$0xff] %v415_v46 }
  0xd8   : > { %v405_v47 = vpop.f32.mrf.mxu1  ;;  %v336_v48 = vpop.f32.mrf.mxu0 }
  0xd9   : > { %v406_v49 = vadd.f32 %v730_v40, %v405_v47  ;;  %358 = vst [vmem:[%s1095_s11 + $0x8] sm:$0xff] %v336_v48 }
  0xdb   : > { %427 = vst [vmem:[%s1099_s9 + $0x8] sm:$0xff] %v406_v49 }
  0xdc   : > { %v417_v50 = vpop.f32.mrf.mxu3 }
  0xdd   : > { %v348_v51 = vpop.f32.mrf.mxu2  ;;  %v418_v52 = vadd.f32 %v730_v40, %v417_v50 }
  0xde   : > { %362 = vst [vmem:[%s1095_s11 + $0x28] sm:$0xff] %v348_v51 }
  0xdf   : > { %431 = vst [vmem:[%s1099_s9 + $0x28] sm:$0xff] %v418_v52 }
  0xe0   : > { %v408_v53 = vpop.f32.mrf.mxu1  ;;  %v339_v54 = vpop.f32.mrf.mxu0 }
  0xe1   : > { %v409_v55 = vadd.f32 %v730_v40, %v408_v53  ;;  %359 = vst [vmem:[%s1095_s11 + $0x10] sm:$0xff] %v339_v54 }
  0xe3   : > { %428 = vst [vmem:[%s1099_s9 + $0x10] sm:$0xff] %v409_v55 }
  0xe4   : > { %v420_v56 = vpop.f32.mrf.mxu3 }
  0xe5   : > { %v351_v57 = vpop.f32.mrf.mxu2  ;;  %v421_v58 = vadd.f32 %v730_v40, %v420_v56 }
  0xe6   : > { %363 = vst [vmem:[%s1095_s11 + $0x30] sm:$0xff] %v351_v57 }
  0xe7   : > { %432 = vst [vmem:[%s1099_s9 + $0x30] sm:$0xff] %v421_v58 }
  0xe8   : > { %v411_v59 = vpop.f32.mrf.mxu1  ;;  %v342_v60 = vpop.f32.mrf.mxu0 }
  0xe9   : > { %v412_v61 = vadd.f32 %v730_v40, %v411_v59  ;;  %360 = vst [vmem:[%s1095_s11 + $0x18] sm:$0xff] %v342_v60 }
  0xeb   : > { %429 = vst [vmem:[%s1099_s9 + $0x18] sm:$0xff] %v412_v61 }
  0xec   : > { %v423_v62 = vpop.f32.mrf.mxu3 }
  0xed   : > { %v354_v63 = vpop.f32.mrf.mxu2  ;;  %v424_v0 = vadd.f32 %v730_v40, %v423_v62 }
  0xee   : > { %364 = vst [vmem:[%s1095_s11 + $0x38] sm:$0xff] %v354_v63 }
  0xef   : > { %848 = shalt.err (!%p845_p10)
}
  0xf0   : > { %s929_s11 = smov 128   ;;  %s930_s7 = smov 8   ;;  %433 = vst [vmem:[%s1099_s9 + $0x38] sm:$0xff] %v424_v0 }
  0xf1   : > { %664 = dma.vmem_to_hbm [thread:$0]  (%p1033_p3), %s1121_s30, 1024, %s455_s16, %s435_s28, %s929_s11, %s929_s11, %s930_s7  }
  0xf2   : > { %s440_s26 = scalar_lea.sflag [#allocation10], %s1066_s8  ;;  %s863_s12 = sshra.s32 %s1128_s10, 4  ;;  %s864_s12 = int_to_ptr.hbm [resolvable:$true] %s863_s12 }
  0xf3   : > { %s865_s13 = scalar_lea.hbm %s864_s12, 64  ;;  %s869_s15 = scalar_lea.hbm %s1180_s5, 128 }
  0xf4   : > { %p866_p12 = scmp.ne.s32.totalorder %s864_s12, %s865_s13  ;;  %p870_p5 = scmp.lt.s32.totalorder %s864_s12, %s1180_s5 }
  0xf5   : > { %p871_p7 = scmp.lt.s32.totalorder %s869_s15, %s865_s13 }
  0xf6   : > { %p867_p13 = pnand %p866_p12, %p1033_p3 }
  0xf7   : > { %p872_p1 = por %p871_p7, %p870_p5 }
  0xf8   : > { %p868_p0 = pneg %p867_p13 }
  0xfa   : > { %p873_p4 = pnand %p872_p1, %p868_p0 }
  0xfc   : > { %876 = shalt.err (!%p873_p4)
}
  0xfd   : > { %665 = dma.vmem_to_hbm [thread:$0]  (%p1033_p3), %s1125_s22, 1024, %s1128_s10, %s440_s26, %s929_s11, %s929_s11, %s930_s7  }
  0xfe PF: > { %s486_s8 = sand.u32 1, %s911_s18   ;;  %p1188_p8 = scmp.ge.s32.totalorder %s923_s21, 2 }
  0xff   : > { %s487_s9 = scalar_lea.sflag [#allocation4], %s486_s8 }
 0x100   : > { %p680_p11 = pnand %p1188_p8, %p996_p6 }
 0x102   : > { %p681_p2 = pneg %p680_p11 }
 0x104   : > { %902 = dma.done.wait (%p681_p2), %s487_s9, 1024  }
 0x105   : > { %904 = vsyncadd (%p681_p2), %s487_s9, 4294966272  ;;  %s497_s30 = scalar_lea.sflag [#allocation10], %s486_s8 }
 0x106   : > { %906 = dma.done.wait (%p681_p2), %s497_s30, 1024  }
 0x107   : > { %908 = vsyncadd (%p681_p2), %s497_s30, 4294966272  ;;  %p23_p3 = scmp.ge.s32.totalorder %s1023_s14, 4   ;;  %s1189_s18 = smov %s915_s19 }
 0x108   : > { %s1190_s19 = smov %s919_s20  ;;  %s1191_s20 = smov %s1039_s23 }
 0x109   : > { %s1192_s21 = smov %s1023_s14  ;;  %25 = sbr.rel (!%p23_p3) target bundleno = 8 (0x8), region = 106 }
 0x10e   :  { %503 = vsyncpa [#allocation3], 1 }
 0x10f   :  { %505 = vsyncpa [#allocation3 + $0x1], 1 }
 0x110   :  { %506 = vsyncpa [#allocation6], 1 }
 0x111   :  { %507 = vsyncpa [#allocation4], 1 }
 0x112   :  { %509 = vsyncpa [#allocation4 + $0x1], 1 }
 0x113   :  { %510 = vsyncpa [#allocation10], 1 }
 0x114   :  { %512 = vsyncpa [#allocation10 + $0x1], 1 }

</bundles_post_ra>
